<compile_context>
chip_gen: v7x
topology: tpu7x:2x2x1
jax: 0.10.0
libtpu: 0.0.40
codegen_flags: <defaults>
</compile_context>

<pallas_src>
import jax
import jax.numpy as jnp
from jax.experimental import pallas as pl
from jax.experimental.pallas import tpu as pltpu  # noqa: F401  (TPU backend)

NEG_SLOPE = 0.01   # acti_func_param for LeakyReLU


# --------------------------- the Pallas kernel ---------------------------
def pe_block_kernel(x_ref, r_ref, b_ref, w1_ref, b1_ref, w2_ref, b2_ref, o_ref):
    x = x_ref[...]                                                    # (N*C, P) f32, lane-dense

    # ----- spatial pooling:  f = p_w_repeat + p_h_repeat  (factored, 2 MXU matmuls) -----
    pooled = jnp.dot(x, r_ref[...], preferred_element_type=jnp.float32)     # (N*C, H+W)
    f = jnp.dot(pooled, b_ref[...], preferred_element_type=jnp.float32)     # (N*C, P)

    # ----- conv1: 1x1 conv C -> C/2 (block-diag over batch), LeakyReLU -----
    f1 = jnp.dot(w1_ref[...], f,
                 preferred_element_type=jnp.float32) + b1_ref[...]          # (N*C/2, P)
    f1 = jnp.where(f1 >= 0, f1, NEG_SLOPE * f1)

    # ----- conv2: 1x1 conv C/2 -> C (block-diag over batch), Sigmoid -----
    f2 = jnp.dot(w2_ref[...], f1,
                 preferred_element_type=jnp.float32) + b2_ref[...]          # (N*C, P)
    gate = jax.nn.sigmoid(f2)                                               # EUP

    # ----- residual gating:  out = gate * x + x  (full-lane store) -----
    o_ref[...] = gate * x + x


# --------------------------- constants builders ---------------------------
def make_pool_factors(h, w):
    """Factored pooling:  (x @ R) @ B  ==  p_w_repeat + p_h_repeat.

    Pixel p = h_idx*W + w_idx (row-major flatten of (H, W)).
      R: (P, H+W)  column h      = [h_idx(p)==h] / W   (row average  -> p_w)
                   column H + w  = [w_idx(p)==w] / H   (col average  -> p_h)
      B: (H+W, P)  row h         = [h_idx(p)==h]       (broadcast p_w over W)
                   row H + w     = [w_idx(p)==w]       (broadcast p_h over H)
    """
    h_idx = jnp.repeat(jnp.arange(h), w)                  # (P,) pixel -> row
    w_idx = jnp.tile(jnp.arange(w), h)                    # (P,) pixel -> col
    red_h = (h_idx[:, None] == jnp.arange(h)[None, :]).astype(jnp.float32) / float(w)
    red_w = (w_idx[:, None] == jnp.arange(w)[None, :]).astype(jnp.float32) / float(h)
    r_mat = jnp.concatenate([red_h, red_w], axis=1)       # (P, H+W)
    bro_h = (jnp.arange(h)[:, None] == h_idx[None, :]).astype(jnp.float32)
    bro_w = (jnp.arange(w)[:, None] == w_idx[None, :]).astype(jnp.float32)
    b_mat = jnp.concatenate([bro_h, bro_w], axis=0)       # (H+W, P)
    return r_mat, b_mat


# --------------------------- wrapper ---------------------------
def pe_block_forward(x_nchw, w1, b1, w2, b2):
    """x_nchw: (N, C, H, W) f32; w1:(C/2,C) b1:(C/2,) w2:(C,C/2) b2:(C,)."""
    n, c, h, w = x_nchw.shape
    cmid = w1.shape[0]
    p = h * w
    nc = n * c
    nmid = n * cmid

    # Glue reshapes / constant folding (plain JAX, hoisted by jit in practice).
    x_flat = x_nchw.reshape(nc, p)                        # (N*C, P) lane-dense
    r_mat, b_mat = make_pool_factors(h, w)                # (P, H+W), (H+W, P)
    eye_n = jnp.eye(n, dtype=jnp.float32)
    w1_big = jnp.kron(eye_n, w1)                          # (N*C/2, N*C) block-diag
    w2_big = jnp.kron(eye_n, w2)                          # (N*C, N*C/2) block-diag
    b1_big = jnp.tile(b1, n).reshape(nmid, 1)
    b2_big = jnp.tile(b2, n).reshape(nc, 1)

    flops = 2 * (nc * p * (h + w)        # x @ R
                 + nc * (h + w) * p      # pooled @ B
                 + nmid * nc * p         # conv1 (block-diag)
                 + nc * nmid * p)        # conv2 (block-diag)
    bytes_accessed = 4 * (2 * nc * p                 # x in + out
                          + 2 * p * (h + w)          # R + B
                          + 2 * nmid * nc            # w1_big + w2_big
                          + nmid + nc)               # biases

    out = pl.pallas_call(
        pe_block_kernel,
        out_shape=jax.ShapeDtypeStruct((nc, p), jnp.float32),
        cost_estimate=pl.CostEstimate(
            flops=int(flops),
            transcendentals=int(nc * p),             # sigmoid
            bytes_accessed=int(bytes_accessed)),
    )(x_flat, r_mat, b_mat, w1_big, b1_big, w2_big, b2_big)
    return out.reshape(n, c, h, w)


# ---------------- pure-JAX reference (for verification) ----------------
def ref_forward(x_nchw, w1, b1, w2, b2):
    n, c, h, w = x_nchw.shape
    p_w = jnp.sum(x_nchw, axis=-1, keepdims=True) / w      # (N,C,H,1)
    p_h = jnp.sum(x_nchw, axis=-2, keepdims=True) / h      # (N,C,1,W)
    f = p_w + p_h                                           # broadcast == repeat
    f1 = jnp.einsum('nchw,oc->nohw', f, w1) + b1[None, :, None, None]
    f1 = jnp.where(f1 >= 0, f1, NEG_SLOPE * f1)
    f2 = jnp.einsum('nchw,oc->nohw', f1, w2) + b2[None, :, None, None]
    gate = jax.nn.sigmoid(f2)
    return gate * x_nchw + x_nchw


if __name__ == "__main__":
    N, C, H, W = 2, 32, 16, 16
    Cmid = C // 2

    key = jax.random.PRNGKey(0)
    ks = jax.random.split(key, 5)

    # Deterministic synthetic parameters (PyTorch conv weights are (O, I, 1, 1)).
    w1_oihw = 0.3 * jax.random.normal(ks[0], (Cmid, C, 1, 1), jnp.float32)
    b1 = 0.1 * jax.random.normal(ks[1], (Cmid,), jnp.float32)
    w2_oihw = 0.3 * jax.random.normal(ks[2], (C, Cmid, 1, 1), jnp.float32)
    b2 = 0.1 * jax.random.normal(ks[3], (C,), jnp.float32)
    w1 = w1_oihw[:, :, 0, 0]                                # (Cmid, C)
    w2 = w2_oihw[:, :, 0, 0]                                # (C, Cmid)

    # Input in the PyTorch NCHW convention (kernel consumes it natively).
    x_nchw = jax.random.normal(ks[4], (N, C, H, W), jnp.float32)

    fwd = jax.jit(pe_block_forward)
    out = jax.block_until_ready(fwd(x_nchw, w1, b1, w2, b2))

    ref = jax.block_until_ready(ref_forward(x_nchw, w1, b1, w2, b2))

    assert out.shape == (N, C, H, W)
    max_err = float(jnp.max(jnp.abs(out - ref)))
    assert max_err < 1e-3, f"mismatch vs reference: {max_err}"
    print("KERNEL_OK")
</pallas_src>

<mosaic_0001>
module attributes {stable_mosaic.version = 11 : i64} {
  func.func @pe_block_kernel(%arg0: memref<64x256xf32, #tpu.memory_space<vmem>>, %arg1: memref<256x32xf32, #tpu.memory_space<vmem>>, %arg2: memref<32x256xf32, #tpu.memory_space<vmem>>, %arg3: memref<32x64xf32, #tpu.memory_space<vmem>>, %arg4: memref<32x1xf32, #tpu.memory_space<vmem>>, %arg5: memref<64x32xf32, #tpu.memory_space<vmem>>, %arg6: memref<64x1xf32, #tpu.memory_space<vmem>>, %arg7: memref<64x256xf32, #tpu.memory_space<vmem>>) attributes {dimension_semantics = [], scalar_prefetch = 0 : i64, scratch_operands = 0 : i64, tpu.core_type = #tpu.core_type<tc>} {
    %c0 = arith.constant 0 : index
    %c0_0 = arith.constant 0 : index
    %0 = vector.load %arg0[%c0, %c0_0] : memref<64x256xf32, #tpu.memory_space<vmem>>, vector<64x256xf32>
    %c0_1 = arith.constant 0 : index
    %c0_2 = arith.constant 0 : index
    %1 = vector.load %arg1[%c0_1, %c0_2] : memref<256x32xf32, #tpu.memory_space<vmem>>, vector<256x32xf32>
    %cst = arith.constant dense<0.000000e+00> : vector<64x32xf32>
    %2 = tpu.matmul %0, %1, %cst {dimension_numbers = #tpu.dot_dimension_numbers<[1], [0], [0], [1], [0, 0, 1, 1], [], []>} : vector<64x256xf32>, vector<256x32xf32>, vector<64x32xf32> -> vector<64x32xf32>
    %c0_3 = arith.constant 0 : index
    %c0_4 = arith.constant 0 : index
    %3 = vector.load %arg2[%c0_3, %c0_4] : memref<32x256xf32, #tpu.memory_space<vmem>>, vector<32x256xf32>
    %cst_5 = arith.constant dense<0.000000e+00> : vector<64x256xf32>
    %4 = tpu.matmul %2, %3, %cst_5 {dimension_numbers = #tpu.dot_dimension_numbers<[1], [0], [0], [1], [0, 0, 1, 1], [], []>} : vector<64x32xf32>, vector<32x256xf32>, vector<64x256xf32> -> vector<64x256xf32>
    %c0_6 = arith.constant 0 : index
    %c0_7 = arith.constant 0 : index
    %5 = vector.load %arg3[%c0_6, %c0_7] : memref<32x64xf32, #tpu.memory_space<vmem>>, vector<32x64xf32>
    %cst_8 = arith.constant dense<0.000000e+00> : vector<32x256xf32>
    %6 = tpu.matmul %5, %4, %cst_8 {dimension_numbers = #tpu.dot_dimension_numbers<[1], [0], [0], [1], [0, 0, 1, 1], [], []>} : vector<32x64xf32>, vector<64x256xf32>, vector<32x256xf32> -> vector<32x256xf32>
    %c0_9 = arith.constant 0 : index
    %c0_10 = arith.constant 0 : index
    %7 = vector.load %arg4[%c0_9, %c0_10] : memref<32x1xf32, #tpu.memory_space<vmem>>, vector<32x1xf32>
    %8 = vector.broadcast %7 : vector<32x1xf32> to vector<32x256xf32>
    %9 = arith.addf %6, %8 : vector<32x256xf32>
    %cst_11 = arith.constant 0.000000e+00 : f32
    %10 = vector.broadcast %cst_11 : f32 to vector<32x256xf32>
    %11 = arith.cmpf oge, %9, %10 : vector<32x256xf32>
    %cst_12 = arith.constant 0.00999999977 : f32
    %12 = vector.broadcast %cst_12 : f32 to vector<32x256xf32>
    %13 = arith.mulf %12, %9 : vector<32x256xf32>
    %14 = arith.select %11, %9, %13 : vector<32x256xi1>, vector<32x256xf32>
    %c0_13 = arith.constant 0 : index
    %c0_14 = arith.constant 0 : index
    %15 = vector.load %arg5[%c0_13, %c0_14] : memref<64x32xf32, #tpu.memory_space<vmem>>, vector<64x32xf32>
    %cst_15 = arith.constant dense<0.000000e+00> : vector<64x256xf32>
    %16 = tpu.matmul %15, %14, %cst_15 {dimension_numbers = #tpu.dot_dimension_numbers<[1], [0], [0], [1], [0, 0, 1, 1], [], []>} : vector<64x32xf32>, vector<32x256xf32>, vector<64x256xf32> -> vector<64x256xf32>
    %c0_16 = arith.constant 0 : index
    %c0_17 = arith.constant 0 : index
    %17 = vector.load %arg6[%c0_16, %c0_17] : memref<64x1xf32, #tpu.memory_space<vmem>>, vector<64x1xf32>
    %18 = vector.broadcast %17 : vector<64x1xf32> to vector<64x256xf32>
    %19 = arith.addf %16, %18 : vector<64x256xf32>
    %20 = arith.negf %19 : vector<64x256xf32>
    %21 = math.exp %20 : vector<64x256xf32>
    %cst_18 = arith.constant 1.000000e+00 : f32
    %22 = vector.broadcast %cst_18 : f32 to vector<64x256xf32>
    %23 = arith.addf %22, %21 : vector<64x256xf32>
    %24 = arith.divf %22, %23 : vector<64x256xf32>
    %25 = arith.mulf %24, %0 : vector<64x256xf32>
    %26 = arith.addf %25, %0 : vector<64x256xf32>
    %c0_19 = arith.constant 0 : index
    %c0_20 = arith.constant 0 : index
    %27 = vector.load %arg7[%c0_19, %c0_20] : memref<64x256xf32, #tpu.memory_space<vmem>>, vector<64x256xf32>
    tpu.vector_store %arg7[%c0_19, %c0_20], %26 {strides = array<i32>} : memref<64x256xf32, #tpu.memory_space<vmem>>, vector<64x256xf32>,
    return
  }
}

</mosaic_0001>

<bundles_post_ra>
// kernel: eq.30
= control target key start
LH: loop header
LB: loop body
LE: loop exit
PB: predicated region body
PF: predicated region fallthrough
CT: control target
= control target key end

     0   :  { %s7_s6 = smov 3  ;;  %s21_s9 = smov 3  ;;  %vm4_vm0 = vcmask 130048   ;;  %vm11_vm1 = vcmask 1048448   ;;  %vm18_vm2 = vcmask 917248   ;;  %vm25_vm3 = vcmask 786048   ;;  %s119_s0 = inlined_call_operand.vmem [shape: s32[16,16], index: 0, kind: input, shape index: {}]   ;;  %s120_s1 = inlined_call_operand.vmem [shape: s32[256], index: 1, kind: output, shape index: {}]  }
   0x1   :  { %v61_v0 = vld [vmem:[%s119_s0 + $0x7] ss:$8 sm:%s7_s6]   ;;  %s75_s10 = smov 112   ;;  %v63_v1 = vld [vmem:[%s119_s0 + $0x5] ss:$8 sm:%s21_s9]   ;;  %s14_s13 = smov 3 }
   0x2   :  { %9 = vrot.lane.b32.xlu0 %v61_v0, %s75_s10  ;;  %s76_s14 = smov 80   ;;  %v62_v2 = vld [vmem:[%s119_s0 + $0x6] ss:$8 sm:%s14_s13]   ;;  %s28_s17 = smov 3  ;;  %vm32_vm4 = vcmask 654848   ;;  %vm39_vm5 = vcmask 523648  }
   0x3   :  { %23 = vrot.lane.b32.xlu1 %v63_v1, %s76_s14  ;;  %v64_v3 = vld [vmem:[%s119_s0 + $0x4] ss:$8 sm:%s28_s17]   ;;  %s35_s20 = smov 3  ;;  %s42_s21 = smov 3  ;;  %vm46_vm6 = vcmask 392448   ;;  %vm53_vm7 = vcmask 261248  }
   0x4   :  { %s77_s22 = smov 96   ;;  %s78_s23 = smov 64   ;;  %v65_v4 = vld [vmem:[%s119_s0 + $0x3] ss:$8 sm:%s35_s20]   ;;  %v66_v5 = vld [vmem:[%s119_s0 + $0x2] ss:$8 sm:%s42_s21]  }
   0x5   :  { %s2_s26 = smov 3  ;;  %s49_s29 = smov 3 }
   0x6   :  { %16 = vrot.lane.b32.xlu0 %v62_v2, %s77_s22  ;;  %v3_v6 = vld [vmem:[%s119_s0] ss:$8 sm:%s2_s26]   ;;  %s79_s3 = smov 48   ;;  %s80_s4 = smov 32  }
   0x7   :  { %30 = vrot.lane.b32.xlu1 %v64_v3, %s78_s23  ;;  %5 = vst.msk [vmem:[#allocation0] sm:$0x3] %vm4_vm0, %v3_v6   ;;  %v67_v7 = vld [vmem:[%s119_s0 + $0x1] ss:$8 sm:%s49_s29]   ;;  %s81_s0 = smov 16  }
   0xa   :  { %37 = vrot.lane.b32.xlu0 %v65_v4, %s79_s3 }
   0xb   :  { %44 = vrot.lane.b32.xlu1 %v66_v5, %s80_s4 }
   0xe   :  { %51 = vrot.lane.b32.xlu0 %v67_v7, %s81_s0 }
  0x74   :  { %v10_v8 = vpop.permute.xlu0 %9  }
  0x75   :  { %12 = vst.msk [vmem:[#allocation0] sm:$0x3] %vm11_vm1, %v10_v8   ;;  %v24_v9 = vpop.permute.xlu1 %23  }
  0x78   :  { %v17_v10 = vpop.permute.xlu0 %16  }
  0x79   :  { %19 = vst.msk [vmem:[#allocation0] sm:$0x3] %vm18_vm2, %v17_v10   ;;  %v31_v11 = vpop.permute.xlu1 %30  }
  0x7a   :  { %26 = vst.msk [vmem:[#allocation0] sm:$0x3] %vm25_vm3, %v24_v9  }
  0x7b   :  { %33 = vst.msk [vmem:[#allocation0] sm:$0x3] %vm32_vm4, %v31_v11  }
  0x7c   :  { %v38_v12 = vpop.permute.xlu0 %37  }
  0x7d   :  { %40 = vst.msk [vmem:[#allocation0] sm:$0x3] %vm39_vm5, %v38_v12   ;;  %v45_v13 = vpop.permute.xlu1 %44  }
  0x7e   :  { %47 = vst.msk [vmem:[#allocation0] sm:$0x3] %vm46_vm6, %v45_v13  }
  0x80   :  { %v52_v14 = vpop.permute.xlu0 %51  }
  0x81   :  { %54 = vst.msk [vmem:[#allocation0] sm:$0x3] %vm53_vm7, %v52_v14  }
  0x88   :  { %v58_v15 = vld [vmem:[#allocation0] sm:$0x3] }
  0x89   :  { %60 = vst [vmem:[%s120_s1] sm:$0x3] %v58_v15 }

// kernel: tile.25
= control target key start
LH: loop header
LB: loop body
LE: loop exit
PB: predicated region body
PF: predicated region fallthrough
CT: control target
= control target key end

     0   :  { %s22_s0 = inlined_call_operand.vmem [shape: f32[16], index: 0, kind: input, shape index: {}]   ;;  %s23_s1 = inlined_call_operand.vmem [shape: f32[2,16], index: 1, kind: output, shape index: {}]  }
   0x1   :  { %v4_v0 = vld [vmem:[%s22_s0] ss:$0 sm:$0xff] }
   0x2   :  { %5 = vst [vmem:[%s23_s1] sm:$0x3] %v4_v0 }

// kernel: tile.0
= control target key start
LH: loop header
LB: loop body
LE: loop exit
PB: predicated region body
PF: predicated region fallthrough
CT: control target
= control target key end

     0   :  { %s130_s8 = smov 125   ;;  %s131_s9 = smov 126   ;;  %vm7_vm0 = vcmask 7168   ;;  %s221_s0 = inlined_call_operand.vmem [shape: f32[2,16], index: 0, kind: input, shape index: {}]   ;;  %s222_s1 = inlined_call_operand.vmem [shape: f32[32,1], index: 1, kind: output, shape index: {}]  }
   0x1   :  { %v4_v0 = vld [vmem:[%s221_s0] sm:$0x3]  ;;  %s129_s0 = smov 127   ;;  %s132_s10 = smov 124  }
   0x2   :  { %5 = vst [vmem:[#allocation0] sm:$0x3] %v4_v0  ;;  %s133_s11 = smov 123   ;;  %s134_s12 = smov 122  }
   0x3   :  { %s135_s13 = smov 121   ;;  %s136_s14 = smov 120  }
   0x4   :  { %s137_s17 = smov 119   ;;  %s138_s18 = smov 118  }
   0x5   :  { %s139_s19 = smov 117   ;;  %s140_s20 = smov 116  }
   0x6   :  { %s141_s21 = smov 115   ;;  %s142_s22 = smov 114  }
   0x7   :  { %s143_s23 = smov 113  }
   0x9   :  { %v9_v1 = vld [vmem:[#allocation0] sm:$0x3]  }
   0xa   :  { %v21_v2 = vld [vmem:[#allocation0] sm:$0x3]   ;;  %10 = vrot.lane.b32.xlu0 %v9_v1, %s129_s0 }
   0xb   :  { %22 = vrot.lane.b32.xlu1 %v21_v2, %s130_s8  ;;  %v15_v3 = vld [vmem:[#allocation0] sm:$0x3]  }
   0xc   :  { %v27_v4 = vld [vmem:[#allocation0] sm:$0x3]  }
   0xd   :  { %v33_v5 = vld [vmem:[#allocation0] sm:$0x3]  }
   0xe   :  { %16 = vrot.lane.b32.xlu0 %v15_v3, %s131_s9  ;;  %v39_v6 = vld [vmem:[#allocation0] sm:$0x3]  }
   0xf   :  { %28 = vrot.lane.b32.xlu1 %v27_v4, %s132_s10  ;;  %v45_v7 = vld [vmem:[#allocation0] sm:$0x3]  }
  0x10   :  { %v51_v8 = vld [vmem:[#allocation0] sm:$0x3]  }
  0x11   :  { %v57_v9 = vld [vmem:[#allocation0] sm:$0x3]  }
  0x12   :  { %34 = vrot.lane.b32.xlu0 %v33_v5, %s133_s11  ;;  %v63_v10 = vld [vmem:[#allocation0] sm:$0x3]  }
  0x13   :  { %40 = vrot.lane.b32.xlu1 %v39_v6, %s134_s12  ;;  %v6_v11 = vld [vmem:[#allocation0] sm:$0x3]  }
  0x14   :  { %8 = vst.msk [vmem:[%s222_s1] ss:$16 sm:$0x3] %vm7_vm0, %v6_v11   ;;  %v69_v12 = vld [vmem:[#allocation0] sm:$0x3]  }
  0x15   :  { %v75_v13 = vld [vmem:[#allocation0] sm:$0x3]  }
  0x16   :  { %46 = vrot.lane.b32.xlu0 %v45_v7, %s135_s13  ;;  %v81_v14 = vld [vmem:[#allocation0] sm:$0x3]  }
  0x17   :  { %52 = vrot.lane.b32.xlu1 %v51_v8, %s136_s14  ;;  %v87_v15 = vld [vmem:[#allocation0] sm:$0x3]  }
  0x18   :  { %v93_v16 = vld [vmem:[#allocation0] sm:$0x3]  }
  0x1a   :  { %58 = vrot.lane.b32.xlu0 %v57_v9, %s137_s17 }
  0x1b   :  { %64 = vrot.lane.b32.xlu1 %v63_v10, %s138_s18 }
  0x1e   :  { %70 = vrot.lane.b32.xlu0 %v69_v12, %s139_s19 }
  0x1f   :  { %76 = vrot.lane.b32.xlu1 %v75_v13, %s140_s20 }
  0x22   :  { %82 = vrot.lane.b32.xlu0 %v81_v14, %s141_s21 }
  0x23   :  { %88 = vrot.lane.b32.xlu1 %v87_v15, %s142_s22 }
  0x26   :  { %94 = vrot.lane.b32.xlu0 %v93_v16, %s143_s23 }
  0x7c   :  { %v11_v17 = vpop.permute.xlu0 %10  }
  0x7d   :  { %v23_v18 = vpop.permute.xlu1 %22   ;;  %99 = vst.msk [vmem:[%s222_s1 + $0x1] ss:$16 sm:$0x3] %vm7_vm0, %v11_v17  }
  0x7e   :  { %101 = vst.msk [vmem:[%s222_s1 + $0x3] ss:$16 sm:$0x3] %vm7_vm0, %v23_v18  }
  0x80   :  { %v17_v19 = vpop.permute.xlu0 %16  }
  0x81   :  { %v29_v20 = vpop.permute.xlu1 %28   ;;  %100 = vst.msk [vmem:[%s222_s1 + $0x2] ss:$16 sm:$0x3] %vm7_vm0, %v17_v19  }
  0x82   :  { %102 = vst.msk [vmem:[%s222_s1 + $0x4] ss:$16 sm:$0x3] %vm7_vm0, %v29_v20  }
  0x84   :  { %v35_v21 = vpop.permute.xlu0 %34  }
  0x85   :  { %v41_v22 = vpop.permute.xlu1 %40   ;;  %103 = vst.msk [vmem:[%s222_s1 + $0x5] ss:$16 sm:$0x3] %vm7_vm0, %v35_v21  }
  0x86   :  { %104 = vst.msk [vmem:[%s222_s1 + $0x6] ss:$16 sm:$0x3] %vm7_vm0, %v41_v22  }
  0x88   :  { %v47_v23 = vpop.permute.xlu0 %46  }
  0x89   :  { %v53_v24 = vpop.permute.xlu1 %52   ;;  %105 = vst.msk [vmem:[%s222_s1 + $0x7] ss:$16 sm:$0x3] %vm7_vm0, %v47_v23  }
  0x8a   :  { %106 = vst.msk [vmem:[%s222_s1 + $0x8] ss:$16 sm:$0x3] %vm7_vm0, %v53_v24  }
  0x8c   :  { %v59_v25 = vpop.permute.xlu0 %58  }
  0x8d   :  { %v65_v26 = vpop.permute.xlu1 %64   ;;  %107 = vst.msk [vmem:[%s222_s1 + $0x9] ss:$16 sm:$0x3] %vm7_vm0, %v59_v25  }
  0x8e   :  { %108 = vst.msk [vmem:[%s222_s1 + $0xa] ss:$16 sm:$0x3] %vm7_vm0, %v65_v26  }
  0x90   :  { %v71_v27 = vpop.permute.xlu0 %70  }
  0x91   :  { %v77_v28 = vpop.permute.xlu1 %76   ;;  %109 = vst.msk [vmem:[%s222_s1 + $0xb] ss:$16 sm:$0x3] %vm7_vm0, %v71_v27  }
  0x92   :  { %110 = vst.msk [vmem:[%s222_s1 + $0xc] ss:$16 sm:$0x3] %vm7_vm0, %v77_v28  }
  0x94   :  { %v83_v29 = vpop.permute.xlu0 %82  }
  0x95   :  { %v89_v30 = vpop.permute.xlu1 %88   ;;  %111 = vst.msk [vmem:[%s222_s1 + $0xd] ss:$16 sm:$0x3] %vm7_vm0, %v83_v29  }
  0x96   :  { %112 = vst.msk [vmem:[%s222_s1 + $0xe] ss:$16 sm:$0x3] %vm7_vm0, %v89_v30  }
  0x98   :  { %v95_v31 = vpop.permute.xlu0 %94  }
  0x99   :  { %113 = vst.msk [vmem:[%s222_s1 + $0xf] ss:$16 sm:$0x3] %vm7_vm0, %v95_v31  }

// kernel: tile.30
= control target key start
LH: loop header
LB: loop body
LE: loop exit
PB: predicated region body
PF: predicated region fallthrough
CT: control target
= control target key end

     0   :  { %s22_s0 = inlined_call_operand.vmem [shape: f32[32], index: 0, kind: input, shape index: {}]   ;;  %s23_s1 = inlined_call_operand.vmem [shape: f32[2,32], index: 1, kind: output, shape index: {}]  }
   0x1   :  { %v4_v0 = vld [vmem:[%s22_s0] ss:$0 sm:$0xff] }
   0x2   :  { %5 = vst [vmem:[%s23_s1] sm:$0x3] %v4_v0 }

// kernel: tile.1
= control target key start
LH: loop header
LB: loop body
LE: loop exit
PB: predicated region body
PF: predicated region fallthrough
CT: control target
= control target key end

     0   :  { %s354_s8 = smov 125   ;;  %s355_s9 = smov 126   ;;  %vm7_vm0 = vcmask 7168   ;;  %s653_s0 = inlined_call_operand.vmem [shape: f32[2,32], index: 0, kind: input, shape index: {}]   ;;  %s654_s1 = inlined_call_operand.vmem [shape: f32[64,1], index: 1, kind: output, shape index: {}]  }
   0x1   :  { %v4_v0 = vld [vmem:[%s653_s0] sm:$0x3]  ;;  %s353_s0 = smov 127   ;;  %s356_s10 = smov 124  }
   0x2   :  { %5 = vst [vmem:[#allocation0] sm:$0x3] %v4_v0  ;;  %s357_s11 = smov 123   ;;  %s358_s12 = smov 122  }
   0x3   :  { %s359_s13 = smov 121   ;;  %s360_s14 = smov 120  }
   0x4   :  { %s361_s15 = smov 119   ;;  %s362_s16 = smov 118  }
   0x5   :  { %s363_s17 = smov 117   ;;  %s364_s18 = smov 116  }
   0x6   :  { %s365_s19 = smov 115   ;;  %s366_s20 = smov 114  }
   0x7   :  { %s367_s21 = smov 113   ;;  %s368_s22 = smov 112  }
   0x8   :  { %s369_s23 = smov 111   ;;  %s370_s24 = smov 110  }
   0x9   :  { %v11_v1 = vld [vmem:[#allocation0] sm:$0x3]   ;;  %s371_s25 = smov 109   ;;  %s372_s26 = smov 108  }
   0xa   :  { %v27_v2 = vld [vmem:[#allocation0] sm:$0x3]   ;;  %12 = vrot.lane.b32.xlu0 %v11_v1, %s353_s0  ;;  %s373_s27 = smov 107   ;;  %s374_s28 = smov 106  }
   0xb   :  { %28 = vrot.lane.b32.xlu1 %v27_v2, %s354_s8  ;;  %v19_v3 = vld [vmem:[#allocation0] sm:$0x3]   ;;  %s375_s29 = smov 105   ;;  %s376_s30 = smov 104  }
   0xc   :  { %v35_v4 = vld [vmem:[#allocation0] sm:$0x3]   ;;  %s377_s6 = smov 103   ;;  %s378_s7 = smov 102  }
   0xd   :  { %v43_v5 = vld [vmem:[#allocation0] sm:$0x3]   ;;  %s379_s0 = smov 101   ;;  %s380_s8 = smov 100  }
   0xe   :  { %20 = vrot.lane.b32.xlu0 %v19_v3, %s355_s9  ;;  %v51_v6 = vld [vmem:[#allocation0] sm:$0x3]   ;;  %s381_s9 = smov 99  }
   0xf   :  { %36 = vrot.lane.b32.xlu1 %v35_v4, %s356_s10  ;;  %v59_v7 = vld [vmem:[#allocation0] sm:$0x3]   ;;  %s382_s10 = smov 98  }
  0x10   :  { %v67_v8 = vld [vmem:[#allocation0] sm:$0x3]  }
  0x11   :  { %v75_v9 = vld [vmem:[#allocation0] sm:$0x3]  }
  0x12   :  { %44 = vrot.lane.b32.xlu0 %v43_v5, %s357_s11  ;;  %v83_v10 = vld [vmem:[#allocation0] sm:$0x3]   ;;  %s383_s11 = smov 97  }
  0x13   :  { %52 = vrot.lane.b32.xlu1 %v51_v6, %s358_s12  ;;  %v91_v11 = vld [vmem:[#allocation0] sm:$0x3]  }
  0x14   :  { %v99_v12 = vld [vmem:[#allocation0] sm:$0x3]  }
  0x15   :  { %v107_v13 = vld [vmem:[#allocation0] sm:$0x3]  }
  0x16   :  { %60 = vrot.lane.b32.xlu0 %v59_v7, %s359_s13  ;;  %v115_v14 = vld [vmem:[#allocation0] sm:$0x3]  }
  0x17   :  { %68 = vrot.lane.b32.xlu1 %v67_v8, %s360_s14  ;;  %v123_v15 = vld [vmem:[#allocation0] sm:$0x3]  }
  0x18   :  { %v131_v16 = vld [vmem:[#allocation0] sm:$0x3]  }
  0x19   :  { %v139_v17 = vld [vmem:[#allocation0] sm:$0x3]  }
  0x1a   :  { %76 = vrot.lane.b32.xlu0 %v75_v9, %s361_s15  ;;  %v147_v18 = vld [vmem:[#allocation0] sm:$0x3]  }
  0x1b   :  { %84 = vrot.lane.b32.xlu1 %v83_v10, %s362_s16  ;;  %v155_v19 = vld [vmem:[#allocation0] sm:$0x3]  }
  0x1c   :  { %v163_v20 = vld [vmem:[#allocation0] sm:$0x3]  }
  0x1d   :  { %v171_v21 = vld [vmem:[#allocation0] sm:$0x3]  }
  0x1e   :  { %92 = vrot.lane.b32.xlu0 %v91_v11, %s363_s17  ;;  %v179_v22 = vld [vmem:[#allocation0] sm:$0x3]  }
  0x1f   :  { %100 = vrot.lane.b32.xlu1 %v99_v12, %s364_s18  ;;  %v187_v23 = vld [vmem:[#allocation0] sm:$0x3]  }
  0x20   :  { %v195_v24 = vld [vmem:[#allocation0] sm:$0x3]  }
  0x21   :  { %v203_v25 = vld [vmem:[#allocation0] sm:$0x3]  }
  0x22   :  { %108 = vrot.lane.b32.xlu0 %v107_v13, %s365_s19  ;;  %v211_v26 = vld [vmem:[#allocation0] sm:$0x3]  }
  0x23   :  { %116 = vrot.lane.b32.xlu1 %v115_v14, %s366_s20  ;;  %v6_v27 = vld [vmem:[#allocation0] sm:$0x3]  }
  0x24   :  { %8 = vst.msk [vmem:[%s654_s1] sm:$0x1] %vm7_vm0, %v6_v27   ;;  %259 = vst.msk [vmem:[%s654_s1 + $0x1f] sm:$0x2] %vm7_vm0, %v6_v27   ;;  %v219_v28 = vld [vmem:[#allocation0] sm:$0x3]  }
  0x25   :  { %v227_v29 = vld [vmem:[#allocation0] sm:$0x3]  }
  0x26   :  { %124 = vrot.lane.b32.xlu0 %v123_v15, %s367_s21  ;;  %v235_v30 = vld [vmem:[#allocation0] sm:$0x3]  }
  0x27   :  { %132 = vrot.lane.b32.xlu1 %v131_v16, %s368_s22  ;;  %v243_v31 = vld [vmem:[#allocation0] sm:$0x3]  }
  0x28   :  { %v251_v32 = vld [vmem:[#allocation0] sm:$0x3]  }
  0x2a   :  { %140 = vrot.lane.b32.xlu0 %v139_v17, %s369_s23 }
  0x2b   :  { %148 = vrot.lane.b32.xlu1 %v147_v18, %s370_s24 }
  0x2e   :  { %156 = vrot.lane.b32.xlu0 %v155_v19, %s371_s25 }
  0x2f   :  { %164 = vrot.lane.b32.xlu1 %v163_v20, %s372_s26 }
  0x32   :  { %172 = vrot.lane.b32.xlu0 %v171_v21, %s373_s27 }
  0x33   :  { %180 = vrot.lane.b32.xlu1 %v179_v22, %s374_s28 }
  0x36   :  { %188 = vrot.lane.b32.xlu0 %v187_v23, %s375_s29 }
  0x37   :  { %196 = vrot.lane.b32.xlu1 %v195_v24, %s376_s30 }
  0x3a   :  { %204 = vrot.lane.b32.xlu0 %v203_v25, %s377_s6 }
  0x3b   :  { %212 = vrot.lane.b32.xlu1 %v211_v26, %s378_s7 }
  0x3e   :  { %220 = vrot.lane.b32.xlu0 %v219_v28, %s379_s0 }
  0x3f   :  { %228 = vrot.lane.b32.xlu1 %v227_v29, %s380_s8 }
  0x42   :  { %236 = vrot.lane.b32.xlu0 %v235_v30, %s381_s9 }
  0x43   :  { %244 = vrot.lane.b32.xlu1 %v243_v31, %s382_s10 }
  0x46   :  { %252 = vrot.lane.b32.xlu0 %v251_v32, %s383_s11 }
  0x7c   :  { %v13_v33 = vpop.permute.xlu0 %12  }
  0x7d   :  { %v29_v34 = vpop.permute.xlu1 %28   ;;  %260 = vst.msk [vmem:[%s654_s1 + $0x1] sm:$0x1] %vm7_vm0, %v13_v33   ;;  %261 = vst.msk [vmem:[%s654_s1 + $0x20] sm:$0x2] %vm7_vm0, %v13_v33  }
  0x7e   :  { %264 = vst.msk [vmem:[%s654_s1 + $0x3] sm:$0x1] %vm7_vm0, %v29_v34   ;;  %265 = vst.msk [vmem:[%s654_s1 + $0x22] sm:$0x2] %vm7_vm0, %v29_v34  }
  0x80   :  { %v21_v35 = vpop.permute.xlu0 %20  }
  0x81   :  { %v37_v36 = vpop.permute.xlu1 %36   ;;  %262 = vst.msk [vmem:[%s654_s1 + $0x2] sm:$0x1] %vm7_vm0, %v21_v35   ;;  %263 = vst.msk [vmem:[%s654_s1 + $0x21] sm:$0x2] %vm7_vm0, %v21_v35  }
  0x82   :  { %266 = vst.msk [vmem:[%s654_s1 + $0x4] sm:$0x1] %vm7_vm0, %v37_v36   ;;  %267 = vst.msk [vmem:[%s654_s1 + $0x23] sm:$0x2] %vm7_vm0, %v37_v36  }
  0x84   :  { %v45_v37 = vpop.permute.xlu0 %44  }
  0x85   :  { %v53_v38 = vpop.permute.xlu1 %52   ;;  %268 = vst.msk [vmem:[%s654_s1 + $0x5] sm:$0x1] %vm7_vm0, %v45_v37   ;;  %269 = vst.msk [vmem:[%s654_s1 + $0x24] sm:$0x2] %vm7_vm0, %v45_v37  }
  0x86   :  { %270 = vst.msk [vmem:[%s654_s1 + $0x6] sm:$0x1] %vm7_vm0, %v53_v38   ;;  %271 = vst.msk [vmem:[%s654_s1 + $0x25] sm:$0x2] %vm7_vm0, %v53_v38  }
  0x88   :  { %v61_v39 = vpop.permute.xlu0 %60  }
  0x89   :  { %v69_v40 = vpop.permute.xlu1 %68   ;;  %272 = vst.msk [vmem:[%s654_s1 + $0x7] sm:$0x1] %vm7_vm0, %v61_v39   ;;  %273 = vst.msk [vmem:[%s654_s1 + $0x26] sm:$0x2] %vm7_vm0, %v61_v39  }
  0x8a   :  { %274 = vst.msk [vmem:[%s654_s1 + $0x8] sm:$0x1] %vm7_vm0, %v69_v40   ;;  %275 = vst.msk [vmem:[%s654_s1 + $0x27] sm:$0x2] %vm7_vm0, %v69_v40  }
  0x8c   :  { %v77_v41 = vpop.permute.xlu0 %76  }
  0x8d   :  { %v85_v42 = vpop.permute.xlu1 %84   ;;  %276 = vst.msk [vmem:[%s654_s1 + $0x9] sm:$0x1] %vm7_vm0, %v77_v41   ;;  %277 = vst.msk [vmem:[%s654_s1 + $0x28] sm:$0x2] %vm7_vm0, %v77_v41  }
  0x8e   :  { %278 = vst.msk [vmem:[%s654_s1 + $0xa] sm:$0x1] %vm7_vm0, %v85_v42   ;;  %279 = vst.msk [vmem:[%s654_s1 + $0x29] sm:$0x2] %vm7_vm0, %v85_v42  }
  0x90   :  { %v93_v43 = vpop.permute.xlu0 %92  }
  0x91   :  { %v101_v44 = vpop.permute.xlu1 %100   ;;  %280 = vst.msk [vmem:[%s654_s1 + $0xb] sm:$0x1] %vm7_vm0, %v93_v43   ;;  %281 = vst.msk [vmem:[%s654_s1 + $0x2a] sm:$0x2] %vm7_vm0, %v93_v43  }
  0x92   :  { %282 = vst.msk [vmem:[%s654_s1 + $0xc] sm:$0x1] %vm7_vm0, %v101_v44   ;;  %283 = vst.msk [vmem:[%s654_s1 + $0x2b] sm:$0x2] %vm7_vm0, %v101_v44  }
  0x94   :  { %v109_v45 = vpop.permute.xlu0 %108  }
  0x95   :  { %v117_v46 = vpop.permute.xlu1 %116   ;;  %284 = vst.msk [vmem:[%s654_s1 + $0xd] sm:$0x1] %vm7_vm0, %v109_v45   ;;  %285 = vst.msk [vmem:[%s654_s1 + $0x2c] sm:$0x2] %vm7_vm0, %v109_v45  }
  0x96   :  { %286 = vst.msk [vmem:[%s654_s1 + $0xe] sm:$0x1] %vm7_vm0, %v117_v46   ;;  %287 = vst.msk [vmem:[%s654_s1 + $0x2d] sm:$0x2] %vm7_vm0, %v117_v46  }
  0x98   :  { %v125_v47 = vpop.permute.xlu0 %124  }
  0x99   :  { %v133_v48 = vpop.permute.xlu1 %132   ;;  %288 = vst.msk [vmem:[%s654_s1 + $0xf] sm:$0x1] %vm7_vm0, %v125_v47   ;;  %289 = vst.msk [vmem:[%s654_s1 + $0x2e] sm:$0x2] %vm7_vm0, %v125_v47  }
  0x9a   :  { %290 = vst.msk [vmem:[%s654_s1 + $0x10] sm:$0x1] %vm7_vm0, %v133_v48   ;;  %291 = vst.msk [vmem:[%s654_s1 + $0x2f] sm:$0x2] %vm7_vm0, %v133_v48  }
  0x9c   :  { %v141_v49 = vpop.permute.xlu0 %140  }
  0x9d   :  { %v149_v50 = vpop.permute.xlu1 %148   ;;  %292 = vst.msk [vmem:[%s654_s1 + $0x11] sm:$0x1] %vm7_vm0, %v141_v49   ;;  %293 = vst.msk [vmem:[%s654_s1 + $0x30] sm:$0x2] %vm7_vm0, %v141_v49  }
  0x9e   :  { %294 = vst.msk [vmem:[%s654_s1 + $0x12] sm:$0x1] %vm7_vm0, %v149_v50   ;;  %295 = vst.msk [vmem:[%s654_s1 + $0x31] sm:$0x2] %vm7_vm0, %v149_v50  }
  0xa0   :  { %v157_v51 = vpop.permute.xlu0 %156  }
  0xa1   :  { %v165_v52 = vpop.permute.xlu1 %164   ;;  %296 = vst.msk [vmem:[%s654_s1 + $0x13] sm:$0x1] %vm7_vm0, %v157_v51   ;;  %297 = vst.msk [vmem:[%s654_s1 + $0x32] sm:$0x2] %vm7_vm0, %v157_v51  }
  0xa2   :  { %298 = vst.msk [vmem:[%s654_s1 + $0x14] sm:$0x1] %vm7_vm0, %v165_v52   ;;  %299 = vst.msk [vmem:[%s654_s1 + $0x33] sm:$0x2] %vm7_vm0, %v165_v52  }
  0xa4   :  { %v173_v53 = vpop.permute.xlu0 %172  }
  0xa5   :  { %v181_v54 = vpop.permute.xlu1 %180   ;;  %300 = vst.msk [vmem:[%s654_s1 + $0x15] sm:$0x1] %vm7_vm0, %v173_v53   ;;  %301 = vst.msk [vmem:[%s654_s1 + $0x34] sm:$0x2] %vm7_vm0, %v173_v53  }
  0xa6   :  { %302 = vst.msk [vmem:[%s654_s1 + $0x16] sm:$0x1] %vm7_vm0, %v181_v54   ;;  %303 = vst.msk [vmem:[%s654_s1 + $0x35] sm:$0x2] %vm7_vm0, %v181_v54  }
  0xa8   :  { %v189_v55 = vpop.permute.xlu0 %188  }
  0xa9   :  { %v197_v56 = vpop.permute.xlu1 %196   ;;  %304 = vst.msk [vmem:[%s654_s1 + $0x17] sm:$0x1] %vm7_vm0, %v189_v55   ;;  %305 = vst.msk [vmem:[%s654_s1 + $0x36] sm:$0x2] %vm7_vm0, %v189_v55  }
  0xaa   :  { %306 = vst.msk [vmem:[%s654_s1 + $0x18] sm:$0x1] %vm7_vm0, %v197_v56   ;;  %307 = vst.msk [vmem:[%s654_s1 + $0x37] sm:$0x2] %vm7_vm0, %v197_v56  }
  0xac   :  { %v205_v57 = vpop.permute.xlu0 %204  }
  0xad   :  { %v213_v58 = vpop.permute.xlu1 %212   ;;  %308 = vst.msk [vmem:[%s654_s1 + $0x19] sm:$0x1] %vm7_vm0, %v205_v57   ;;  %309 = vst.msk [vmem:[%s654_s1 + $0x38] sm:$0x2] %vm7_vm0, %v205_v57  }
  0xae   :  { %310 = vst.msk [vmem:[%s654_s1 + $0x1a] sm:$0x1] %vm7_vm0, %v213_v58   ;;  %311 = vst.msk [vmem:[%s654_s1 + $0x39] sm:$0x2] %vm7_vm0, %v213_v58  }
  0xb0   :  { %v221_v59 = vpop.permute.xlu0 %220  }
  0xb1   :  { %v229_v60 = vpop.permute.xlu1 %228   ;;  %312 = vst.msk [vmem:[%s654_s1 + $0x1b] sm:$0x1] %vm7_vm0, %v221_v59   ;;  %313 = vst.msk [vmem:[%s654_s1 + $0x3a] sm:$0x2] %vm7_vm0, %v221_v59  }
  0xb2   :  { %314 = vst.msk [vmem:[%s654_s1 + $0x1c] sm:$0x1] %vm7_vm0, %v229_v60   ;;  %315 = vst.msk [vmem:[%s654_s1 + $0x3b] sm:$0x2] %vm7_vm0, %v229_v60  }
  0xb4   :  { %v237_v61 = vpop.permute.xlu0 %236  }
  0xb5   :  { %v245_v62 = vpop.permute.xlu1 %244   ;;  %316 = vst.msk [vmem:[%s654_s1 + $0x1d] sm:$0x1] %vm7_vm0, %v237_v61   ;;  %317 = vst.msk [vmem:[%s654_s1 + $0x3c] sm:$0x2] %vm7_vm0, %v237_v61  }
  0xb6   :  { %318 = vst.msk [vmem:[%s654_s1 + $0x1e] sm:$0x1] %vm7_vm0, %v245_v62   ;;  %319 = vst.msk [vmem:[%s654_s1 + $0x3d] sm:$0x2] %vm7_vm0, %v245_v62  }
  0xb8   :  { %v253_v63 = vpop.permute.xlu0 %252  }
  0xb9   :  { %320 = vst.msk [vmem:[%s654_s1 + $0x1f] sm:$0x1] %vm7_vm0, %v253_v63   ;;  %321 = vst.msk [vmem:[%s654_s1 + $0x3e] sm:$0x2] %vm7_vm0, %v253_v63  }

// kernel: pe_block_forward.1
= control target key start
LH: loop header
LB: loop body
LE: loop exit
PB: predicated region body
PF: predicated region fallthrough
CT: control target
= control target key end

     0   :  { %vm187_vm0 = vcmask 261120   ;;  %vm353_vm1 = vcmask 523264   ;;  %s1494_s1 = inlined_call_operand.vmem [shape: f32[256,32], index: 1, kind: input, shape index: {}]   ;;  %s1495_s0 = inlined_call_operand.vmem [shape: f32[64,256], index: 0, kind: input, shape index: {}]   ;;  %s1496_s2 = inlined_call_operand.vmem [shape: f32[32,256], index: 2, kind: input, shape index: {}]   ;;  %s1497_s4 = inlined_call_operand.vmem [shape: f32[32,1], index: 4, kind: input, shape index: {}]   ;;  %s1498_s6 = inlined_call_operand.vmem [shape: f32[64,1], index: 6, kind: input, shape index: {}]   ;;  %s1499_s3 = inlined_call_operand.vmem [shape: f32[32,64], index: 3, kind: input, shape index: {}]   ;;  %s1500_s5 = inlined_call_operand.vmem [shape: f32[64,32], index: 5, kind: input, shape index: {}]   ;;  %s1501_s7 = inlined_call_operand.vmem [shape: f32[64,256], index: 7, kind: output, shape index: {}]  }
   0x1   :  { %v58_v0 = vld [vmem:[%s1494_s1 + $0x80] sm:$0xff]  ;;  %v59_v1 = vld [vmem:[%s1494_s1 + $0x88] sm:$0xff]  ;;  %v60_v5 = vld [vmem:[%s1494_s1 + $0x90] sm:$0xff] }
   0x2   :  { %v42_v2 = vld [vmem:[%s1494_s1] sm:$0xff]  ;;  %v912_v3 = vpack.c.bf16 %v59_v1, %v58_v0  ;;  %v43_v4 = vld [vmem:[%s1494_s1 + $0x8] sm:$0xff]  ;;  %v61_v6 = vld [vmem:[%s1494_s1 + $0x98] sm:$0xff] }
   0x3   :  { %v914_v7 = vpack.c.bf16 %v43_v4, %v42_v2  ;;  %v916_v8 = vpack.c.bf16 %v61_v6, %v60_v5  ;;  %v44_v9 = vld [vmem:[%s1494_s1 + $0x10] sm:$0xff]  ;;  %v45_v10 = vld [vmem:[%s1494_s1 + $0x18] sm:$0xff]  ;;  %v62_v11 = vld [vmem:[%s1494_s1 + $0xa0] sm:$0xff] }
   0x4   :  { %913 = vmatprep.subr.bf16.mxu0 %v912_v3  ;;  %v63_v12 = vld [vmem:[%s1494_s1 + $0xa8] sm:$0xff]  ;;  %v918_v13 = vpack.c.bf16 %v45_v10, %v44_v9  ;;  %v46_v15 = vld [vmem:[%s1494_s1 + $0x20] sm:$0xff]  ;;  %v64_v17 = vld [vmem:[%s1494_s1 + $0xb0] sm:$0xff] }
   0x5   :  { %915 = vmatpush3.bf16.msra.mxu0 %v914_v7  ;;  %v920_v14 = vpack.c.bf16 %v63_v12, %v62_v11  ;;  %v47_v16 = vld [vmem:[%s1494_s1 + $0x28] sm:$0xff]  ;;  %v65_v18 = vld [vmem:[%s1494_s1 + $0xb8] sm:$0xff]  ;;  %v48_v21 = vld [vmem:[%s1494_s1 + $0x30] sm:$0xff]  ;;  %v1048_v12 = vmov 0.0  }
   0x6   :  { %917 = vmatprep.subr.bf16.mxu0 %v916_v8  ;;  %v922_v19 = vpack.c.bf16 %v47_v16, %v46_v15  ;;  %v924_v20 = vpack.c.bf16 %v65_v18, %v64_v17  ;;  %v49_v22 = vld [vmem:[%s1494_s1 + $0x38] sm:$0xff]  ;;  %v66_v23 = vld [vmem:[%s1494_s1 + $0xc0] sm:$0xff]  ;;  %v67_v24 = vld [vmem:[%s1494_s1 + $0xc8] sm:$0xff]  ;;  %294 = vmatprep.mubr.f32.mxu1 %v1048_v12 }
   0x7   :  { %v1147_v25 = vld [vmem:[%s1495_s0 + $0x8] sm:$0xff]  ;;  %v926_v26 = vpack.c.bf16 %v49_v22, %v48_v21  ;;  %v928_v27 = vpack.c.bf16 %v67_v24, %v66_v23  ;;  %v50_v28 = vld [vmem:[%s1494_s1 + $0x40] sm:$0xff]  ;;  %v68_v30 = vld [vmem:[%s1494_s1 + $0xd0] sm:$0xff] }
   0x8   :  { %138 = vmatprep.mubr.f32.mxu0 %v1147_v25  ;;  %v51_v29 = vld [vmem:[%s1494_s1 + $0x48] sm:$0xff]  ;;  %v69_v31 = vld [vmem:[%s1494_s1 + $0xd8] sm:$0xff]  ;;  %v179_v35 = vld [vmem:[%s1496_s2] sm:$0xff] }
   0x9   :  { %919 = vmatpush3.bf16.msra.mxu0 %v918_v13  ;;  %v930_v32 = vpack.c.bf16 %v51_v29, %v50_v28  ;;  %v180_v33 = vld [vmem:[%s1496_s2 + $0x8] sm:$0xff]  ;;  %v182_v34 = vld [vmem:[%s1496_s2 + $0x18] sm:$0xff]  ;;  %v932_v36 = vpack.c.bf16 %v69_v31, %v68_v30  ;;  %v52_v37 = vld [vmem:[%s1494_s1 + $0x50] sm:$0xff] }
   0xa   :  { %921 = vmatprep.subr.bf16.mxu0 %v920_v14  ;;  %v53_v38 = vld [vmem:[%s1494_s1 + $0x58] sm:$0xff]  ;;  %v944_v39 = vpack.c.bf16 %v182_v34, %v180_v33  ;;  %v181_v40 = vld [vmem:[%s1496_s2 + $0x10] sm:$0xff]  ;;  %v70_v41 = vld [vmem:[%s1494_s1 + $0xe0] sm:$0xff] }
   0xb   :  { %v71_v42 = vld [vmem:[%s1494_s1 + $0xe8] sm:$0xff]  ;;  %v946_v43 = vpack.c.bf16 %v181_v40, %v179_v35  ;;  %v934_v44 = vpack.c.bf16 %v53_v38, %v52_v37  ;;  %v54_v46 = vld [vmem:[%s1494_s1 + $0x60] sm:$0xff]  ;;  %v72_v48 = vld [vmem:[%s1494_s1 + $0xf0] sm:$0xff]  ;;  %v1049_v38 = vmov 0  }
   0xc   :  { %976 = vmatprep.subr.bf16.mxu1 %v944_v39  ;;  %v936_v45 = vpack.c.bf16 %v71_v42, %v70_v41  ;;  %v55_v47 = vld [vmem:[%s1494_s1 + $0x68] sm:$0xff]  ;;  %v73_v49 = vld [vmem:[%s1494_s1 + $0xf8] sm:$0xff]  ;;  %v56_v52 = vld [vmem:[%s1494_s1 + $0x70] sm:$0xff]  ;;  %982 = vset.pattern.permute.xlu0 %v1049_v38 }
   0xd   :  { %923 = vmatpush3.bf16.msra.mxu0 %v922_v19  ;;  %978 = vmatpush1.bf16.msra.mxu1 %v946_v43  ;;  %v938_v50 = vpack.c.bf16 %v55_v47, %v54_v46  ;;  %v940_v51 = vpack.c.bf16 %v73_v49, %v72_v48  ;;  %v57_v53 = vld [vmem:[%s1494_s1 + $0x78] sm:$0xff]  ;;  %v1207_v55 = vld [vmem:[%s1495_s0] sm:$0xff]  ;;  %v1219_v57 = vld [vmem:[%s1495_s0 + $0x10] sm:$0xff] }
   0xe   :  { %925 = vmatprep.subr.bf16.mxu0 %v924_v20  ;;  %v942_v54 = vpack.c.bf16 %v57_v53, %v56_v52  ;;  %v1212_v56 = vld [vmem:[%s1495_s0 + $0x18] sm:$0xff]  ;;  %v1224_v58 = vld [vmem:[%s1495_s0 + $0x28] sm:$0xff]  ;;  %v1231_v59 = vld [vmem:[%s1495_s0 + $0x20] sm:$0xff]  ;;  %983 = vset.pattern.permute.xlu1 %v1049_v38 }
   0xf   :  { %v1236_v60 = vld [vmem:[%s1495_s0 + $0x38] sm:$0xff]  ;;  %v1243_v61 = vld [vmem:[%s1495_s0 + $0x30] sm:$0xff]  ;;  %v1248_v62 = vld [vmem:[%s1495_s0 + $0x48] sm:$0xff] }
  0x10   :  { %v1255_v63 = vld [vmem:[%s1495_s0 + $0x40] sm:$0xff]  ;;  %v1260_v0 = vld [vmem:[%s1495_s0 + $0x58] sm:$0xff]  ;;  %v1267_v1 = vld [vmem:[%s1495_s0 + $0x50] sm:$0xff] }
  0x11   :  { %927 = vmatpush3.bf16.msra.mxu0 %v926_v26  ;;  %v1272_v2 = vld [vmem:[%s1495_s0 + $0x68] sm:$0xff]  ;;  %v1279_v3 = vld [vmem:[%s1495_s0 + $0x60] sm:$0xff]  ;;  %v1284_v4 = vld [vmem:[%s1495_s0 + $0x78] sm:$0xff] }
  0x12   :  { %929 = vmatprep.subr.bf16.mxu0 %v928_v27  ;;  %v1291_v5 = vld [vmem:[%s1495_s0 + $0x70] sm:$0xff]  ;;  %v184_v6 = vld [vmem:[%s1496_s2 + $0x28] sm:$0xff]  ;;  %v186_v7 = vld [vmem:[%s1496_s2 + $0x38] sm:$0xff] }
  0x13   :  { %v948_v8 = vpack.c.bf16 %v186_v7, %v184_v6  ;;  %v183_v9 = vld [vmem:[%s1496_s2 + $0x20] sm:$0xff]  ;;  %v185_v10 = vld [vmem:[%s1496_s2 + $0x30] sm:$0xff]  ;;  %v330_v41 = vld [vmem:[%s1497_s4 + $0x8] sm:$0xff] }
  0x14   :  { %v950_v11 = vpack.c.bf16 %v185_v10, %v183_v9  ;;  %v331_v40 = vld [vmem:[%s1497_s4 + $0x10] sm:$0xff]  ;;  %v332_v42 = vld [vmem:[%s1497_s4 + $0x18] sm:$0xff]  ;;  %v491_v47 = vld [vmem:[%s1498_s6 + $0x20] sm:$0xff] }
  0x15   :  { %931 = vmatpush3.bf16.msra.mxu0 %v930_v32  ;;  %977 = vmatprep.subr.bf16.mxu1 %v948_v8  ;;  %v490_v46 = vld [vmem:[%s1498_s6 + $0x18] sm:$0xff]  ;;  %v492_v48 = vld [vmem:[%s1498_s6 + $0x28] sm:$0xff]  ;;  %v493_v49 = vld [vmem:[%s1498_s6 + $0x30] sm:$0xff] }
  0x16   :  { %933 = vmatprep.subr.bf16.mxu0 %v932_v36  ;;  %979 = vmatpush1.bf16.msra.mxu1 %v950_v11 }
  0x17   :  { %345 = vperm.xlu1 %983, %v331_v40  }
  0x19   :  { %935 = vmatpush3.bf16.msra.mxu0 %v934_v44  ;;  %v488_v44 = vld [vmem:[%s1498_s6 + $0x8] sm:$0xff] }
  0x1a   :  { %937 = vmatprep.subr.bf16.mxu0 %v936_v45  ;;  %v489_v45 = vld [vmem:[%s1498_s6 + $0x10] sm:$0xff] }
  0x1b   :  { %350 = vperm.xlu1 %983, %v332_v42  }
  0x1d   :  { %939 = vmatpush3.bf16.msra.mxu0 %v938_v50  ;;  %v494_v50 = vld [vmem:[%s1498_s6 + $0x38] sm:$0xff] }
  0x1e   :  { %941 = vmatprep.subr.bf16.mxu0 %v940_v51 }
  0x1f   :  { %502 = vperm.xlu1 %983, %v488_v44  }
  0x21   :  { %943 = vmatpush3.bf16.msra.mxu0 %v942_v54 }
  0x22   :  { %945 = vmatprep.subr.bf16.mxu0 %v944_v39  ;;  %v329_v39 = vld [vmem:[%s1497_s4] sm:$0xff] }
  0x23   :  { %335 = vperm.xlu0 %982, %v329_v39   ;;  %512 = vperm.xlu1 %983, %v490_v46  }
  0x24   :  { %139 = vmatmul.mubr.f32.vlgmr.msra.gmra.mrb[0].mxu0 %v1207_v55 }
  0x25   :  { %143 = vmatprep.mubr.f32.mxu0 %v1212_v56  ;;  %947 = vmatpush1.bf16.msra.mxu0 %v946_v43  ;;  %v487_v43 = vld [vmem:[%s1498_s6] sm:$0xff] }
  0x26   :  { %949 = vmatprep.subr.bf16.mxu0 %v948_v8 }
  0x27   :  { %340 = vperm.xlu0 %982, %v330_v41   ;;  %522 = vperm.xlu1 %983, %v492_v48  }
  0x28   :  { %144 = vmatmul.mubr.f32.gmra.mrb[2].mxu0 %v1219_v57 }
  0x29   :  { %148 = vmatprep.mubr.f32.mxu0 %v1224_v58  ;;  %951 = vmatpush1.bf16.msra.mxu0 %v950_v11 }
  0x2b   :  { %497 = vperm.xlu0 %982, %v487_v43   ;;  %532 = vperm.xlu1 %983, %v494_v50  }
  0x2c   :  { %149 = vmatmul.mubr.f32.gmra.mrb[4].mxu0 %v1231_v59 }
  0x2d   :  { %153 = vmatprep.mubr.f32.mxu0 %v1236_v60 }
  0x2f   :  { %507 = vperm.xlu0 %982, %v489_v45  }
  0x30   :  { %154 = vmatmul.mubr.f32.gmra.mrb[6].mxu0 %v1243_v61 }
  0x31   :  { %158 = vmatprep.mubr.f32.mxu0 %v1248_v62 }
  0x33   :  { %517 = vperm.xlu0 %982, %v491_v47  }
  0x34   :  { %159 = vmatmul.mubr.f32.gmra.mrb[8].mxu0 %v1255_v63 }
  0x35   :  { %163 = vmatprep.mubr.f32.mxu0 %v1260_v0 }
  0x37   :  { %527 = vperm.xlu0 %982, %v493_v49  }
  0x38   :  { %164 = vmatmul.mubr.f32.gmra.mrb[10].mxu0 %v1267_v1 }
  0x39   :  { %168 = vmatprep.mubr.f32.mxu0 %v1272_v2 }
  0x3c   :  { %169 = vmatmul.mubr.f32.gmra.mrb[12].mxu0 %v1279_v3 }
  0x3d   :  { %173 = vmatprep.mubr.f32.mxu0 %v1284_v4 }
  0x40   :  { %174 = vmatmul.mubr.f32.gmra.mrb[14].mxu0 %v1291_v5 }
  0x41   :  { %276 = vmatprep.mubr.f32.mxu0 %v1048_v12 }
  0x96   :  { %v346_v42 = vpop.permute.xlu1 %345 }
  0xf7   :  { %v888_v13 = vpop.f32.mrb[0].mxu0 }
  0xf8   :  { %v889_v14 = vpop.f32.mrb[1].mxu0 }
  0xf9   :  { %v890_v15 = vadd.f32 %v889_v14, %v888_v13 }
  0xfb   :  { %v891_v16 = vpop.f32.mrb[2].mxu0  ;;  %820 = vmatmul.mubr.msk.f32.vlgmr.msra.gmra.mrb[16].mxu0 %vm187_vm0, %v890_v15 }
  0xfc   :  { %v892_v17 = vpop.f32.mrb[3].mxu0  ;;  %282 = vmatprep.mubr.f32.mxu0 %v1048_v12 }
  0xfd   :  { %v893_v18 = vadd.f32 %v892_v17, %v891_v16 }
  0xff   :  { %v894_v19 = vpop.f32.mrb[4].mxu0  ;;  %821 = vmatmul.mubr.msk.f32.gmra.mrb[18].mxu0 %vm187_vm0, %v893_v18 }
 0x100   :  { %v895_v20 = vpop.f32.mrb[5].mxu0  ;;  %288 = vmatprep.mubr.f32.mxu0 %v1048_v12 }
 0x101   :  { %v896_v21 = vadd.f32 %v895_v20, %v894_v19 }
 0x103   :  { %v897_v22 = vpop.f32.mrb[6].mxu0  ;;  %822 = vmatmul.mubr.msk.f32.gmra.mrb[20].mxu0 %vm187_vm0, %v896_v21 }
 0x104   :  { %v898_v23 = vpop.f32.mrb[7].mxu0 }
 0x105   :  { %v899_v24 = vadd.f32 %v898_v23, %v897_v22 }
 0x107   :  { %v900_v26 = vpop.f32.mrb[8].mxu0  ;;  %823 = vmatmul.mubr.msk.f32.vlgmr.msra.gmra.mrb[0].mxu1 %vm187_vm0, %v899_v24 }
 0x108   :  { %v901_v27 = vpop.f32.mrb[9].mxu0  ;;  %300 = vmatprep.mubr.f32.mxu1 %v1048_v12 }
 0x109   :  { %v902_v28 = vadd.f32 %v901_v27, %v900_v26 }
 0x10b   :  { %v903_v29 = vpop.f32.mrb[10].mxu0  ;;  %824 = vmatmul.mubr.msk.f32.gmra.mrb[2].mxu1 %vm187_vm0, %v902_v28  ;;  %v325_v28 = vld [vmem:[%s1499_s3] sm:$0xff] }
 0x10c   :  { %v904_v30 = vpop.f32.mrb[11].mxu0  ;;  %306 = vmatprep.mubr.f32.mxu1 %v1048_v12 }
 0x10d   :  { %v905_v31 = vadd.f32 %v904_v30, %v903_v29  ;;  %v326_v29 = vld [vmem:[%s1499_s3 + $0x8] sm:$0xff]  ;;  %v327_v30 = vld [vmem:[%s1499_s3 + $0x10] sm:$0xff] }
 0x10f   :  { %v906_v32 = vpop.f32.mrb[12].mxu0  ;;  %825 = vmatmul.mubr.msk.f32.gmra.mrb[4].mxu1 %vm187_vm0, %v905_v31  ;;  %v328_v31 = vld [vmem:[%s1499_s3 + $0x18] sm:$0xff] }
 0x110   :  { %v907_v33 = vpop.f32.mrb[13].mxu0  ;;  %312 = vmatprep.mubr.f32.mxu1 %v1048_v12 }
 0x111   :  { %v908_v34 = vadd.f32 %v907_v33, %v906_v32  ;;  %v336_v32 = vpop.permute.xlu0 %335 }
 0x113   :  { %v909_v35 = vpop.f32.mrb[14].mxu0  ;;  %826 = vmatmul.mubr.msk.f32.gmra.mrb[6].mxu1 %vm187_vm0, %v908_v34 }
 0x114   :  { %v910_v36 = vpop.f32.mrb[15].mxu0  ;;  %318 = vmatprep.mubr.f32.mxu1 %v1048_v12 }
 0x115   :  { %v911_v37 = vadd.f32 %v910_v36, %v909_v35 }
 0x117   :  { %827 = vmatmul.mubr.msk.f32.gmra.mrb[8].mxu1 %vm187_vm0, %v911_v37  ;;  %v341_v37 = vpop.permute.xlu0 %340 }
 0x118   :  { %430 = vmatprep.mubr.f32.mxu1 %v1048_v12 }
 0x1ce   :  { %v278_v51 = vpop.f32.mrb[16].mxu0 }
 0x1cf   :  { %v280_v52 = vpop.f32.mrb[17].mxu0 }
 0x1d2   :  { %v284_v53 = vpop.f32.mrb[18].mxu0 }
 0x1d3   :  { %v954_v54 = vpack.c.bf16 %v284_v53, %v278_v51  ;;  %v286_v6 = vpop.f32.mrb[19].mxu0 }
 0x1d4   :  { %v952_v7 = vpack.c.bf16 %v286_v6, %v280_v52 }
 0x1d6   :  { %v290_v8 = vpop.f32.mrb[20].mxu0  ;;  %953 = vmatprep.subr.bf16.mxu1 %v952_v7 }
 0x1d7   :  { %v292_v9 = vpop.f32.mrb[21].mxu0  ;;  %955 = vmatpush1.bf16.msra.mxu1 %v954_v54 }
 0x1da   :  { %v296_v10 = vpop.f32.mrb[0].mxu1 }
 0x1db   :  { %v958_v11 = vpack.c.bf16 %v296_v10, %v290_v8  ;;  %v298_v13 = vpop.f32.mrb[1].mxu1  ;;  %v351_v8 = vpop.permute.xlu1 %350 }
 0x1dc   :  { %v956_v14 = vpack.c.bf16 %v298_v13, %v292_v9 }
 0x1de   :  { %v302_v15 = vpop.f32.mrb[2].mxu1  ;;  %957 = vmatprep.subr.bf16.mxu1 %v956_v14 }
 0x1df   :  { %v304_v16 = vpop.f32.mrb[3].mxu1  ;;  %959 = vmatpush1.bf16.msra.mxu1 %v958_v11 }
 0x1e2   :  { %v308_v17 = vpop.f32.mrb[4].mxu1 }
 0x1e3   :  { %v962_v18 = vpack.c.bf16 %v308_v17, %v302_v15  ;;  %v310_v19 = vpop.f32.mrb[5].mxu1 }
 0x1e4   :  { %v960_v20 = vpack.c.bf16 %v310_v19, %v304_v16 }
 0x1e6   :  { %v314_v21 = vpop.f32.mrb[6].mxu1  ;;  %961 = vmatprep.subr.bf16.mxu1 %v960_v20 }
 0x1e7   :  { %v316_v22 = vpop.f32.mrb[7].mxu1  ;;  %963 = vmatpush1.bf16.msra.mxu1 %v962_v18 }
 0x1ea   :  { %v320_v23 = vpop.f32.mrb[8].mxu1 }
 0x1eb   :  { %v966_v24 = vpack.c.bf16 %v320_v23, %v314_v21  ;;  %v322_v26 = vpop.f32.mrb[9].mxu1 }
 0x1ec   :  { %v964_v27 = vpack.c.bf16 %v322_v26, %v316_v22  ;;  %v480_v26 = vld [vmem:[%s1500_s5 + $0x8] sm:$0xff] }
 0x1ee   :  { %965 = vmatprep.subr.bf16.mxu1 %v964_v27  ;;  %v481_v27 = vld [vmem:[%s1500_s5 + $0x10] sm:$0xff] }
 0x1ef   :  { %967 = vmatpush1.bf16.msra.mxu1 %v966_v24  ;;  %v479_v24 = vld [vmem:[%s1500_s5] sm:$0xff] }
 0x1f2   :  { %828 = vmatmul.mubr.msk.f32.vlgmr.msra.gmra.mrb[10].mxu1 %vm353_vm1, %v325_v28  ;;  %v482_v28 = vld [vmem:[%s1500_s5 + $0x18] sm:$0xff] }
 0x1f3   :  { %436 = vmatprep.mubr.f32.mxu1 %v1048_v12 }
 0x1f6   :  { %829 = vmatmul.mubr.msk.f32.gmra.mrb[12].mxu1 %vm353_vm1, %v326_v29  ;;  %v483_v29 = vld [vmem:[%s1500_s5 + $0x20] sm:$0xff] }
 0x1f7   :  { %442 = vmatprep.mubr.f32.mxu1 %v1048_v12 }
 0x1fa   :  { %830 = vmatmul.mubr.msk.f32.gmra.mrb[14].mxu1 %vm353_vm1, %v327_v30  ;;  %v484_v30 = vld [vmem:[%s1500_s5 + $0x28] sm:$0xff] }
 0x1fb   :  { %448 = vmatprep.mubr.f32.mxu1 %v1048_v12 }
 0x1fe   :  { %831 = vmatmul.mubr.msk.f32.gmra.mrb[16].mxu1 %vm353_vm1, %v328_v31  ;;  %v485_v31 = vld [vmem:[%s1500_s5 + $0x30] sm:$0xff] }
 0x1ff   :  { %623 = vmatprep.mubr.f32.mxu1 %v1048_v12 }
 0x2c5   :  { %v432_v33 = vpop.f32.mrb[10].mxu1 }
 0x2c6   :  { %v433_v34 = vadd.f32 %v432_v33, %v336_v32  ;;  %v434_v35 = vpop.f32.mrb[11].mxu1  ;;  %v498_v33 = vpop.permute.xlu0 %497 }
 0x2c7   :  { %v435_v36 = vadd.f32 %v434_v35, %v336_v32  ;;  %v486_v32 = vld [vmem:[%s1500_s5 + $0x38] sm:$0xff] }
 0x2c8   :  { %v463_v39 = vmul.f32 0.01, %v433_v34  ;;  %vm455_vm2 = vcmp.ge.f32.partialorder %v433_v34, 0.0 }
 0x2c9   :  { %v438_v38 = vpop.f32.mrb[12].mxu1  ;;  %v464_v43 = vmul.f32 0.01, %v435_v36  ;;  %vm456_vm3 = vcmp.ge.f32.partialorder %v435_v36, 0.0 }
 0x2ca   :  { %v439_v40 = vadd.f32 %v438_v38, %v341_v37  ;;  %v440_v41 = vpop.f32.mrb[13].mxu1  ;;  %v471_v48 = vsel %vm455_vm2, %v433_v34, %v463_v39  ;;  %v503_v39 = vpop.permute.xlu1 %502 }
 0x2cb   :  { %v441_v44 = vadd.f32 %v440_v41, %v341_v37  ;;  %v472_v54 = vsel %vm456_vm3, %v435_v36, %v464_v43 }
 0x2cc   :  { %vm457_vm4 = vcmp.ge.f32.partialorder %v439_v40, 0.0  ;;  %v465_v45 = vmul.f32 0.01, %v439_v40 }
 0x2cd   :  { %vm458_vm5 = vcmp.ge.f32.partialorder %v441_v44, 0.0  ;;  %v466_v46 = vmul.f32 0.01, %v441_v44  ;;  %v444_v47 = vpop.f32.mrb[14].mxu1 }
 0x2ce   :  { %v473_v49 = vsel %vm457_vm4, %v439_v40, %v465_v45  ;;  %v445_v50 = vadd.f32 %v444_v47, %v346_v42  ;;  %v446_v51 = vpop.f32.mrb[15].mxu1  ;;  %v508_v45 = vpop.permute.xlu0 %507 }
 0x2cf   :  { %v970_v52 = vpack.c.bf16 %v473_v49, %v471_v48  ;;  %v447_v53 = vadd.f32 %v446_v51, %v346_v42  ;;  %v474_v6 = vsel %vm458_vm5, %v441_v44, %v466_v46 }
 0x2d0   :  { %v968_v7 = vpack.c.bf16 %v474_v6, %v472_v54  ;;  %v467_v10 = vmul.f32 0.01, %v445_v50  ;;  %vm459_vm6 = vcmp.ge.f32.partialorder %v445_v50, 0.0 }
 0x2d1   :  { %v450_v9 = vpop.f32.mrb[16].mxu1  ;;  %v468_v14 = vmul.f32 0.01, %v447_v53  ;;  %vm460_vm7 = vcmp.ge.f32.partialorder %v447_v53, 0.0 }
 0x2d2   :  { %v451_v11 = vadd.f32 %v450_v9, %v351_v8  ;;  %v452_v13 = vpop.f32.mrb[17].mxu1  ;;  %969 = vmatprep.subr.bf16.mxu1 %v968_v7  ;;  %v475_v18 = vsel %vm459_vm6, %v445_v50, %v467_v10 }
 0x2d3   :  { %v453_v15 = vadd.f32 %v452_v13, %v351_v8  ;;  %971 = vmatpush1.bf16.msra.mxu1 %v970_v52  ;;  %v476_v21 = vsel %vm460_vm7, %v447_v53, %v468_v14  ;;  %v513_v52 = vpop.permute.xlu1 %512  ;;  %v518_v13 = vpop.permute.xlu0 %517 }
 0x2d4   :  { %vm461_vm8 = vcmp.ge.f32.partialorder %v451_v11, 0.0  ;;  %v469_v16 = vmul.f32 0.01, %v451_v11 }
 0x2d5   :  { %vm462_vm9 = vcmp.ge.f32.partialorder %v453_v15, 0.0  ;;  %v470_v17 = vmul.f32 0.01, %v453_v15 }
 0x2d6   :  { %v477_v19 = vsel %vm461_vm8, %v451_v11, %v469_v16 }
 0x2d7   :  { %v974_v20 = vpack.c.bf16 %v477_v19, %v475_v18  ;;  %v478_v22 = vsel %vm462_vm9, %v453_v15, %v470_v17 }
 0x2d8   :  { %v972_v23 = vpack.c.bf16 %v478_v22, %v476_v21 }
 0x2da   :  { %973 = vmatprep.subr.bf16.mxu1 %v972_v23 }
 0x2db   :  { %975 = vmatpush1.bf16.msra.mxu1 %v974_v20 }
 0x2de   :  { %832 = vmatmul.mubr.msk.f32.vlgmr.msra.gmra.mrb[18].mxu1 %vm187_vm0, %v479_v24  ;;  %v523_v24 = vpop.permute.xlu1 %522 }
 0x2df   :  { %629 = vmatprep.mubr.f32.mxu1 %v1048_v12 }
 0x2e2   :  { %833 = vmatmul.mubr.msk.f32.gmra.mrb[20].mxu1 %vm187_vm0, %v480_v26 }
 0x2e3   :  { %635 = vmatprep.mubr.f32.mxu1 %v1048_v12 }
 0x2e6   :  { %834 = vmatmul.mubr.msk.f32.gmra.mrb[22].mxu1 %vm187_vm0, %v481_v27 }
 0x2e7   :  { %641 = vmatprep.mubr.f32.mxu1 %v1048_v12 }
 0x2ea   :  { %835 = vmatmul.mubr.msk.f32.gmra.mrb[24].mxu1 %vm187_vm0, %v482_v28 }
 0x2eb   :  { %647 = vmatprep.mubr.f32.mxu1 %v1048_v12 }
 0x2ee   :  { %836 = vmatmul.mubr.msk.f32.gmra.mrb[26].mxu1 %vm187_vm0, %v483_v29 }
 0x2ef   :  { %653 = vmatprep.mubr.f32.mxu1 %v1048_v12 }
 0x2f2   :  { %837 = vmatmul.mubr.msk.f32.gmra.mrb[28].mxu1 %vm187_vm0, %v484_v30 }
 0x2f3   :  { %659 = vmatprep.mubr.f32.mxu1 %v1048_v12 }
 0x2f6   :  { %838 = vmatmul.mubr.msk.f32.gmra.mrb[30].mxu1 %vm187_vm0, %v485_v31 }
 0x2f7   :  { %665 = vmatprep.mubr.f32.mxu1 %v1048_v12 }
 0x2fa   :  { %839 = vmatmul.mubr.msk.f32.gmra.mrb[32].mxu1 %vm187_vm0, %v486_v32 }
 0x3b1   :  { %v625_v34 = vpop.f32.mrb[18].mxu1 }
 0x3b2   :  { %v626_v35 = vadd.f32 %v625_v34, %v498_v33  ;;  %v627_v36 = vpop.f32.mrb[19].mxu1 }
 0x3b3   :  { %v628_v37 = vadd.f32 %v627_v36, %v498_v33  ;;  %v528_v36 = vpop.permute.xlu0 %527 }
 0x3b4   :  { %v840_v38 = vmul.f32 -1.442695, %v626_v35 }
 0x3b5   :  { %v841_v40 = vmul.f32 -1.442695, %v628_v37  ;;  %v631_v41 = vpop.f32.mrb[20].mxu1 }
 0x3b6   :  { %984 = vpow2.f32 %v840_v38  ;;  %v632_v42 = vadd.f32 %v631_v41, %v503_v39  ;;  %v633_v43 = vpop.f32.mrb[21].mxu1 }
 0x3b7   :  { %986 = vpow2.f32 %v841_v40  ;;  %v634_v12 = vadd.f32 %v633_v43, %v503_v39 }
 0x3b8   :  { %v842_v44 = vmul.f32 -1.442695, %v632_v42 }
 0x3b9   :  { %v843_v46 = vmul.f32 -1.442695, %v634_v12  ;;  %v637_v47 = vpop.f32.mrb[22].mxu1 }
 0x3ba   :  { %988 = vpow2.f32 %v842_v44  ;;  %v638_v48 = vadd.f32 %v637_v47, %v508_v45  ;;  %v639_v49 = vpop.f32.mrb[23].mxu1 }
 0x3bb   :  { %990 = vpow2.f32 %v843_v46  ;;  %v640_v50 = vadd.f32 %v639_v49, %v508_v45  ;;  %v533_v46 = vpop.permute.xlu1 %532 }
 0x3bc   :  { %v844_v51 = vmul.f32 -1.442695, %v638_v48 }
 0x3bd   :  { %v845_v53 = vmul.f32 -1.442695, %v640_v50  ;;  %v643_v54 = vpop.f32.mrb[24].mxu1 }
 0x3be   :  { %992 = vpow2.f32 %v844_v51  ;;  %v644_v6 = vadd.f32 %v643_v54, %v513_v52  ;;  %v645_v7 = vpop.f32.mrb[25].mxu1 }
 0x3bf   :  { %994 = vpow2.f32 %v845_v53  ;;  %v646_v8 = vadd.f32 %v645_v7, %v513_v52 }
 0x3c0   :  { %v985_v9 = vpop.eup %984  ;;  %v846_v10 = vmul.f32 -1.442695, %v644_v6 }
 0x3c1   :  { %v987_v11 = vpop.eup %986  ;;  %v720_v14 = vadd.f32 1.0, %v985_v9  ;;  %v847_v15 = vmul.f32 -1.442695, %v646_v8  ;;  %v649_v16 = vpop.f32.mrb[26].mxu1 }
 0x3c2   :  { %v721_v17 = vadd.f32 1.0, %v987_v11  ;;  %996 = vpow2.f32 %v846_v10  ;;  %v650_v18 = vadd.f32 %v649_v16, %v518_v13  ;;  %v651_v19 = vpop.f32.mrb[27].mxu1 }
 0x3c3   :  { %998 = vrcp.f32 %v720_v14  ;;  %v652_v20 = vadd.f32 %v651_v19, %v518_v13 }
 0x3c4   :  { %v989_v21 = vpop.eup %988  ;;  %1000 = vrcp.f32 %v721_v17  ;;  %v848_v22 = vmul.f32 -1.442695, %v650_v18 }
 0x3c5   :  { %v991_v23 = vpop.eup %990  ;;  %v722_v26 = vadd.f32 1.0, %v989_v21  ;;  %1002 = vpow2.f32 %v847_v15  ;;  %v849_v27 = vmul.f32 -1.442695, %v652_v20  ;;  %v655_v28 = vpop.f32.mrb[28].mxu1 }
 0x3c6   :  { %v723_v29 = vadd.f32 1.0, %v991_v23  ;;  %1004 = vpow2.f32 %v848_v22  ;;  %v656_v30 = vadd.f32 %v655_v28, %v523_v24  ;;  %v657_v31 = vpop.f32.mrb[29].mxu1 }
 0x3c7   :  { %1006 = vrcp.f32 %v722_v26  ;;  %v658_v32 = vadd.f32 %v657_v31, %v523_v24 }
 0x3c8   :  { %v993_v33 = vpop.eup %992  ;;  %1008 = vrcp.f32 %v723_v29  ;;  %v850_v34 = vmul.f32 -1.442695, %v656_v30 }
 0x3c9   :  { %v995_v35 = vpop.eup %994  ;;  %v724_v37 = vadd.f32 1.0, %v993_v33  ;;  %1010 = vpow2.f32 %v849_v27  ;;  %v851_v38 = vmul.f32 -1.442695, %v658_v32  ;;  %v661_v39 = vpop.f32.mrb[30].mxu1 }
 0x3ca   :  { %v725_v40 = vadd.f32 1.0, %v995_v35  ;;  %1012 = vpow2.f32 %v850_v34  ;;  %v662_v41 = vadd.f32 %v661_v39, %v528_v36  ;;  %v663_v42 = vpop.f32.mrb[31].mxu1 }
 0x3cb   :  { %1014 = vrcp.f32 %v724_v37  ;;  %v664_v43 = vadd.f32 %v663_v42, %v528_v36 }
 0x3cc   :  { %v997_v12 = vpop.eup %996  ;;  %1016 = vrcp.f32 %v725_v40  ;;  %v852_v44 = vmul.f32 -1.442695, %v662_v41 }
 0x3cd   :  { %v999_v45 = vpop.eup %998  ;;  %v726_v47 = vadd.f32 1.0, %v997_v12  ;;  %1018 = vpow2.f32 %v851_v38  ;;  %v853_v48 = vmul.f32 -1.442695, %v664_v43  ;;  %v667_v49 = vpop.f32.mrb[32].mxu1 }
 0x3ce   :  { %v1001_v50 = vpop.eup %1000  ;;  %v768_v51 = vmul.f32 %v999_v45, %v1207_v55  ;;  %1020 = vpow2.f32 %v852_v44  ;;  %v668_v52 = vadd.f32 %v667_v49, %v533_v46  ;;  %v669_v53 = vpop.f32.mrb[33].mxu1 }
 0x3cf   :  { %v1003_v54 = vpop.eup %1002  ;;  %v769_v6 = vmul.f32 %v1001_v50, %v1147_v25  ;;  %1022 = vrcp.f32 %v726_v47  ;;  %v670_v7 = vadd.f32 %v669_v53, %v533_v46 }
 0x3d0   :  { %v1005_v8 = vpop.eup %1004  ;;  %v784_v9 = vadd.f32 %v768_v51, %v1207_v55  ;;  %v727_v10 = vadd.f32 1.0, %v1003_v54  ;;  %1024 = vpow2.f32 %v853_v48  ;;  %v854_v11 = vmul.f32 -1.442695, %v668_v52 }
 0x3d1   :  { %v1007_v13 = vpop.eup %1006  ;;  %v785_v14 = vadd.f32 %v769_v6, %v1147_v25  ;;  %v728_v15 = vadd.f32 1.0, %v1005_v8  ;;  %v855_v16 = vmul.f32 -1.442695, %v670_v7 }
 0x3d2   :  { %v1009_v17 = vpop.eup %1008  ;;  %800 = vst [vmem:[%s1501_s7] sm:$0xff] %v784_v9  ;;  %v770_v18 = vmul.f32 %v1007_v13, %v1219_v57  ;;  %1026 = vrcp.f32 %v727_v10 }
 0x3d3   :  { %v1011_v19 = vpop.eup %1010  ;;  %801 = vst [vmem:[%s1501_s7 + $0x8] sm:$0xff] %v785_v14  ;;  %v771_v55 = vmul.f32 %v1009_v17, %v1212_v56  ;;  %1028 = vrcp.f32 %v728_v15 }
 0x3d4   :  { %v1013_v20 = vpop.eup %1012  ;;  %v786_v25 = vadd.f32 %v770_v18, %v1219_v57  ;;  %v729_v21 = vadd.f32 1.0, %v1011_v19  ;;  %1030 = vpow2.f32 %v854_v11 }
 0x3d5   :  { %v1015_v22 = vpop.eup %1014  ;;  %v787_v23 = vadd.f32 %v771_v55, %v1212_v56  ;;  %v730_v24 = vadd.f32 1.0, %v1013_v20  ;;  %1032 = vpow2.f32 %v855_v16 }
 0x3d6   :  { %v1017_v26 = vpop.eup %1016  ;;  %802 = vst [vmem:[%s1501_s7 + $0x10] sm:$0xff] %v786_v25  ;;  %v772_v27 = vmul.f32 %v1015_v22, %v1231_v59  ;;  %1034 = vrcp.f32 %v729_v21 }
 0x3d7   :  { %v1019_v28 = vpop.eup %1018  ;;  %803 = vst [vmem:[%s1501_s7 + $0x18] sm:$0xff] %v787_v23  ;;  %v773_v57 = vmul.f32 %v1017_v26, %v1224_v58  ;;  %1036 = vrcp.f32 %v730_v24 }
 0x3d8   :  { %v1021_v29 = vpop.eup %1020  ;;  %v788_v56 = vadd.f32 %v772_v27, %v1231_v59  ;;  %v731_v30 = vadd.f32 1.0, %v1019_v28 }
 0x3d9   :  { %v1023_v31 = vpop.eup %1022  ;;  %v789_v32 = vadd.f32 %v773_v57, %v1224_v58  ;;  %v732_v33 = vadd.f32 1.0, %v1021_v29 }
 0x3da   :  { %v1025_v34 = vpop.eup %1024  ;;  %804 = vst [vmem:[%s1501_s7 + $0x20] sm:$0xff] %v788_v56  ;;  %v774_v35 = vmul.f32 %v1023_v31, %v1243_v61  ;;  %1038 = vrcp.f32 %v731_v30 }
 0x3db   :  { %805 = vst [vmem:[%s1501_s7 + $0x28] sm:$0xff] %v789_v32  ;;  %1040 = vrcp.f32 %v732_v33  ;;  %v733_v36 = vadd.f32 1.0, %v1025_v34 }
 0x3dc   :  { %v1027_v59 = vpop.eup %1026  ;;  %v790_v37 = vadd.f32 %v774_v35, %v1243_v61 }
 0x3dd   :  { %v1029_v38 = vpop.eup %1028  ;;  %v775_v58 = vmul.f32 %v1027_v59, %v1236_v60  ;;  %1042 = vrcp.f32 %v733_v36 }
 0x3de   :  { %v1031_v39 = vpop.eup %1030  ;;  %806 = vst [vmem:[%s1501_s7 + $0x30] sm:$0xff] %v790_v37  ;;  %v776_v40 = vmul.f32 %v1029_v38, %v1255_v63 }
 0x3df   :  { %v1033_v41 = vpop.eup %1032  ;;  %v791_v42 = vadd.f32 %v775_v58, %v1236_v60  ;;  %v734_v43 = vadd.f32 1.0, %v1031_v39 }
 0x3e0   :  { %v1035_v12 = vpop.eup %1034  ;;  %v792_v44 = vadd.f32 %v776_v40, %v1255_v63  ;;  %v735_v45 = vadd.f32 1.0, %v1033_v41 }
 0x3e1   :  { %v1037_v61 = vpop.eup %1036  ;;  %807 = vst [vmem:[%s1501_s7 + $0x38] sm:$0xff] %v791_v42  ;;  %v777_v46 = vmul.f32 %v1035_v12, %v1248_v62  ;;  %1044 = vrcp.f32 %v734_v43 }
 0x3e2   :  { %808 = vst [vmem:[%s1501_s7 + $0x40] sm:$0xff] %v792_v44  ;;  %v778_v47 = vmul.f32 %v1037_v61, %v1267_v1  ;;  %1046 = vrcp.f32 %v735_v45 }
 0x3e3   :  { %v793_v60 = vadd.f32 %v777_v46, %v1248_v62 }
 0x3e4   :  { %v1039_v48 = vpop.eup %1038  ;;  %v794_v63 = vadd.f32 %v778_v47, %v1267_v1 }
 0x3e5   :  { %v1041_v49 = vpop.eup %1040  ;;  %809 = vst [vmem:[%s1501_s7 + $0x48] sm:$0xff] %v793_v60  ;;  %v779_v50 = vmul.f32 %v1039_v48, %v1260_v0 }
 0x3e6   :  { %810 = vst [vmem:[%s1501_s7 + $0x50] sm:$0xff] %v794_v63  ;;  %v780_v51 = vmul.f32 %v1041_v49, %v1279_v3 }
 0x3e7   :  { %v1043_v52 = vpop.eup %1042  ;;  %v795_v53 = vadd.f32 %v779_v50, %v1260_v0 }
 0x3e8   :  { %v796_v62 = vadd.f32 %v780_v51, %v1279_v3  ;;  %v781_v1 = vmul.f32 %v1043_v52, %v1272_v2 }
 0x3e9   :  { %811 = vst [vmem:[%s1501_s7 + $0x58] sm:$0xff] %v795_v53 }
 0x3ea   :  { %812 = vst [vmem:[%s1501_s7 + $0x60] sm:$0xff] %v796_v62  ;;  %v797_v54 = vadd.f32 %v781_v1, %v1272_v2 }
 0x3eb   :  { %v1045_v6 = vpop.eup %1044 }
 0x3ec   :  { %v1047_v7 = vpop.eup %1046  ;;  %813 = vst [vmem:[%s1501_s7 + $0x68] sm:$0xff] %v797_v54  ;;  %v782_v0 = vmul.f32 %v1045_v6, %v1291_v5 }
 0x3ed   :  { %v783_v3 = vmul.f32 %v1047_v7, %v1284_v4 }
 0x3ee   :  { %v798_v8 = vadd.f32 %v782_v0, %v1291_v5 }
 0x3ef   :  { %v799_v9 = vadd.f32 %v783_v3, %v1284_v4 }
 0x3f0   :  { %814 = vst [vmem:[%s1501_s7 + $0x70] sm:$0xff] %v798_v8 }
 0x3f1   :  { %815 = vst [vmem:[%s1501_s7 + $0x78] sm:$0xff] %v799_v9 }

</bundles_post_ra>
